<compile_context>
chip_gen: v6e
topology: v6e:2x2x1
jax: 0.10.0
libtpu: 0.0.40
codegen_flags: <defaults>
</compile_context>

<pallas_src>
import functools

import jax
import jax.numpy as jnp
from jax.experimental import pallas as pl
from jax.experimental.pallas import tpu as pltpu


def _round_up(v, m):
    return ((v + m - 1) // m) * m


def _physical_vmem_bytes():
    try:
        return int(pltpu.get_tpu_info().vmem_capacity_bytes)
    except Exception:
        return 64 << 20  # conservative fallback: v7x has 64 MiB per TensorCore


# ---------------------------------------------------------------------------
# Kernel bodies
# ---------------------------------------------------------------------------
def _ffn_kernel_resident(x_ref, w1_ref, b1_ref, w2_ref, b2_ref, o_ref):
    """Both (Hp, Hp) weights fully resident in VMEM; one pass per row tile."""
    x = x_ref[...]
    # conv1 (1x1) == x @ W1  (MXU, f32 accumulate); bias + ReLU in f32 (VPU).
    h = jnp.dot(x.astype(w1_ref.dtype), w1_ref[...],
                preferred_element_type=jnp.float32)
    h = jnp.maximum(h + b1_ref[...], 0.0)
    # conv2 (1x1) == h @ W2.
    y = jnp.dot(h.astype(w2_ref.dtype), w2_ref[...],
                preferred_element_type=jnp.float32)
    # bias + residual (original-precision x) in f32, cast to output dtype.
    o_ref[...] = (y + b2_ref[...] + x.astype(jnp.float32)).astype(o_ref.dtype)


def _ffn_kernel_ktiled(x_ref, w1_ref, b1_ref, w2_ref, b2_ref, o_ref, acc_ref):
    """Intermediate dim tiled: stream W1 column / W2 row slabs, f32 accumulate."""
    k = pl.program_id(1)

    @pl.when(k == 0)
    def _():
        acc_ref[...] = jnp.zeros_like(acc_ref)

    x = x_ref[...]
    h = jnp.dot(x.astype(w1_ref.dtype), w1_ref[...],
                preferred_element_type=jnp.float32)
    h = jnp.maximum(h + b1_ref[...], 0.0)
    acc_ref[...] += jnp.dot(h.astype(w2_ref.dtype), w2_ref[...],
                            preferred_element_type=jnp.float32)

    @pl.when(k == pl.num_programs(1) - 1)
    def _():
        o_ref[...] = (acc_ref[...] + b2_ref[...]
                      + x.astype(jnp.float32)).astype(o_ref.dtype)


# ---------------------------------------------------------------------------
# Wrappers
# ---------------------------------------------------------------------------
def prepare_ffn_params(w1, b1, w2, b2, *, param_dtype=None):
    """Pad/cast conv1/conv2 params ONCE (hoisted out of the per-call path).

    w1, w2: (H, H) stored as (in, out) -- i.e. Conv1d weight (out, in, 1)
    transposed + squeezed.  b1, b2: (H,).
    """
    H = w1.shape[0]
    Hp = _round_up(max(H, 128), 128)
    dt = jnp.dtype(param_dtype) if param_dtype is not None else w1.dtype
    pad = Hp - H
    if pad:
        w1 = jnp.pad(w1, ((0, pad), (0, pad)))
        w2 = jnp.pad(w2, ((0, pad), (0, pad)))
        b1 = jnp.pad(b1, (0, pad))
        b2 = jnp.pad(b2, (0, pad))
    w1p = w1.astype(dt)
    w2p = w2.astype(dt)
    b1p = b1.astype(jnp.float32).reshape(1, Hp)   # biases stay f32 (VPU epilogue)
    b2p = b2.astype(jnp.float32).reshape(1, Hp)
    return w1p, b1p, w2p, b2p


@functools.partial(jax.jit, static_argnames=("block_rows", "block_k"))
def pointwise_feedforward_prepared(x, w1p, b1p, w2p, b2p, *,
                                   block_rows=512, block_k=None):
    """x: (B, L, H); w*p / b*p: outputs of prepare_ffn_params."""
    B, L, H = x.shape
    Hp = w1p.shape[0]
    M = B * L
    xsize = jnp.dtype(x.dtype).itemsize
    wsize = jnp.dtype(w1p.dtype).itemsize

    # Rows: pad only to a sublane multiple of 8; partial last row block is
    # fine (Pallas discards out-of-bounds writes; rows are independent).
    # Lanes: pad to a lane-dense multiple of 128 only if misaligned.
    M8 = _round_up(max(M, 8), 8)
    x2d = x.reshape(M, H)
    if M8 != M or Hp != H:
        x2d = jnp.pad(x2d, ((0, M8 - M), (0, Hp - H)))

    # Row tile: large to amortize the ~0.35us/grid-step overhead, but ensure
    # >= 2 row blocks when there is enough work so the "parallel" axis can
    # split across the two TensorCores on v7x.
    bm = _round_up(min(block_rows, M8), 8)
    if M8 > 256 and pl.cdiv(M8, bm) < 2:
        bm = _round_up(pl.cdiv(M8, 2), 8)
    grid_m = pl.cdiv(M8, bm)

    # Intermediate-dim tile: keep the full (Hp, Hp) weights resident while a
    # single copy fits comfortably; otherwise stream them in 128-multiple
    # slabs (bounded weight VMEM -> scales to arbitrary H, fits v7x 64 MiB).
    phys_vmem = _physical_vmem_bytes()
    weight_budget = min(24 << 20, phys_vmem // 3)
    if block_k is None:
        if 2 * Hp * Hp * wsize <= weight_budget:
            block_k = Hp
        else:
            block_k = (weight_budget // (4 * Hp * wsize)) // 128 * 128
    block_k = min(max(block_k, 128), Hp)
    block_k = (block_k // 128) * 128
    while Hp % block_k:
        block_k -= 128
    grid_k = Hp // block_k

    if grid_k == 1:
        # ---------------- resident-weight path ----------------
        kernel = _ffn_kernel_resident
        grid = (grid_m,)
        in_specs = [
            pl.BlockSpec((bm, Hp), lambda i: (i, 0)),             # x tile
            pl.BlockSpec(memory_space=pltpu.MemorySpace.VMEM),    # W1 (1 resident copy)
            pl.BlockSpec(memory_space=pltpu.MemorySpace.VMEM),    # b1
            pl.BlockSpec(memory_space=pltpu.MemorySpace.VMEM),    # W2
            pl.BlockSpec(memory_space=pltpu.MemorySpace.VMEM),    # b2
        ]
        out_specs = pl.BlockSpec((bm, Hp), lambda i: (i, 0))
        scratch_shapes = []
        dim_sems = ("parallel",)
        vmem_need = (2 * 2 * bm * Hp * xsize        # x + out tiles (double-buffered)
                     + 2 * Hp * Hp * wsize          # W1 + W2 (single resident copy)
                     + 2 * Hp * 4                   # b1 + b2 (f32)
                     + 3 * bm * Hp * 4)             # f32 h / x-cast / epilogue slabs
    else:
        # ---------------- hidden-dim (k) tiled path ----------------
        kernel = _ffn_kernel_ktiled
        grid = (grid_m, grid_k)
        in_specs = [
            pl.BlockSpec((bm, Hp), lambda i, k: (i, 0)),          # x (resident over k)
            pl.BlockSpec((Hp, block_k), lambda i, k: (0, k)),     # W1 column slab
            pl.BlockSpec((1, block_k), lambda i, k: (0, k)),      # b1 slab
            pl.BlockSpec((block_k, Hp), lambda i, k: (k, 0)),     # W2 row slab
            pl.BlockSpec(memory_space=pltpu.MemorySpace.VMEM),    # b2 (resident)
        ]
        out_specs = pl.BlockSpec((bm, Hp), lambda i, k: (i, 0))
        scratch_shapes = [pltpu.VMEM((bm, Hp), jnp.float32)]      # f32 accumulator
        dim_sems = ("parallel", "arbitrary")
        vmem_need = (2 * 2 * bm * Hp * xsize                      # x + out tiles
                     + 2 * 2 * Hp * block_k * wsize               # W1/W2 slabs (2 bufs)
                     + 2 * block_k * 4 + Hp * 4                   # b1 slabs + b2
                     + bm * Hp * 4                                # accumulator scratch
                     + (bm * block_k + 2 * bm * Hp) * 4)          # f32 h / x-cast slabs

    # Scoped VMEM: actual need + headroom, never above physical capacity.
    vmem_limit = int(min(max(int(vmem_need * 1.25) + (4 << 20), 32 << 20),
                         phys_vmem - (8 << 20)))

    cost = pl.CostEstimate(
        flops=4 * M * Hp * Hp,                    # two (M,Hp)x(Hp,Hp) matmuls
        transcendentals=0,
        bytes_accessed=(2 * M * Hp * xsize + 2 * Hp * Hp * wsize + 2 * Hp * 4),
    )

    out2d = pl.pallas_call(
        kernel,
        out_shape=jax.ShapeDtypeStruct((M8, Hp), x.dtype),
        grid_spec=pltpu.PrefetchScalarGridSpec(
            num_scalar_prefetch=0,
            grid=grid,
            in_specs=in_specs,
            out_specs=out_specs,
            scratch_shapes=scratch_shapes,
        ),
        compiler_params=pltpu.CompilerParams(
            dimension_semantics=dim_sems,
            vmem_limit_bytes=vmem_limit,
        ),
        cost_estimate=cost,
    )(x2d, w1p, b1p, w2p, b2p)

    return out2d[:M, :H].reshape(B, L, H)


def pointwise_feedforward(x, w1, b1, w2, b2, *, block_rows=512, block_k=None,
                          mxu_dtype=None):
    """One-off convenience wrapper.  For repeated calls, run
    prepare_ffn_params once and call pointwise_feedforward_prepared."""
    params = prepare_ffn_params(
        w1, b1, w2, b2, param_dtype=(mxu_dtype if mxu_dtype is not None else x.dtype))
    return pointwise_feedforward_prepared(
        x, *params, block_rows=block_rows, block_k=block_k)


# ---------------------------------------------------------------------------
# Reference + demo
# ---------------------------------------------------------------------------
def reference(x, w1, b1, w2, b2):
    h = jnp.maximum(jnp.einsum("blh,hk->blk", x, w1) + b1, 0.0)
    y = jnp.einsum("blh,hk->blk", h, w2) + b2
    return y + x


def _make_params(key, H, dtype=jnp.float32):
    kw1, kb1, kw2, kb2 = jax.random.split(key, 4)
    # Conv1d(hidden, hidden, 1) params: weight (out, in, 1), bias (out,) --
    # stored here already transposed/squeezed to (in, out).
    scale = 1.0 / (H ** 0.5)
    w1 = jax.random.uniform(kw1, (H, H), minval=-scale, maxval=scale, dtype=dtype)
    b1 = jax.random.uniform(kb1, (H,), minval=-scale, maxval=scale, dtype=dtype)
    w2 = jax.random.uniform(kw2, (H, H), minval=-scale, maxval=scale, dtype=dtype)
    b2 = jax.random.uniform(kb2, (H,), minval=-scale, maxval=scale, dtype=dtype)
    return w1, b1, w2, b2


if __name__ == "__main__":
    key = jax.random.PRNGKey(0)
    kx, kp, kx2, kp2, kx3, kp3 = jax.random.split(key, 6)

    # --- module-spec demo shape: batch=2, seq=8, hidden=32 -------------------
    B, L, H = 2, 8, 32
    x = jax.random.normal(kx, (B, L, H), dtype=jnp.float32)
    w1, b1, w2, b2 = _make_params(kp, H)

    params = prepare_ffn_params(w1, b1, w2, b2)      # hoisted: prepare once
    out = pointwise_feedforward_prepared(x, *params)
    out = jax.block_until_ready(out)
    ref = reference(x, w1, b1, w2, b2)
    assert out.shape == (B, L, H) and out.dtype == x.dtype
    assert jnp.allclose(out, ref, atol=1e-5, rtol=1e-5), "f32 mismatch vs reference"

    # --- bf16 activations, bf16 MXU operands, f32 accumulate -----------------
    out_bf16 = pointwise_feedforward(x.astype(jnp.bfloat16), w1, b1, w2, b2)
    out_bf16 = jax.block_until_ready(out_bf16)
    assert out_bf16.dtype == jnp.bfloat16
    assert jnp.allclose(out_bf16.astype(jnp.float32), ref, atol=1e-1, rtol=1e-1), \
        "bf16 mismatch vs reference"

    # --- f32 activations with bf16 MXU operands (flag-controlled fast path) --
    out_mixed = pointwise_feedforward(x, w1, b1, w2, b2, mxu_dtype=jnp.bfloat16)
    out_mixed = jax.block_until_ready(out_mixed)
    assert out_mixed.dtype == jnp.float32
    assert jnp.allclose(out_mixed, ref, atol=1e-1, rtol=1e-1), "mixed mismatch"

    # --- multi-step row grid with a PARTIAL last block + forced hidden-dim
    #     (k) tiling: 640 rows -> blocks of 512 + 128, Hp=256 with block_k=128
    B2, L2, H2 = 4, 160, 256
    x2 = jax.random.normal(kx2, (B2, L2, H2), dtype=jnp.float32)
    w1b, b1b, w2b, b2b = _make_params(kp2, H2)
    out2 = pointwise_feedforward(x2, w1b, b1b, w2b, b2b, block_k=128)
    out2 = jax.block_until_ready(out2)
    ref2 = reference(x2, w1b, b1b, w2b, b2b)
    assert out2.shape == (B2, L2, H2)
    assert jnp.allclose(out2, ref2, atol=2e-2, rtol=2e-2), "k-tiled mismatch"

    # --- non-aligned hidden dim (lane padding) + odd row count ---------------
    B3, L3, H3 = 3, 17, 48
    x3 = jax.random.normal(kx3, (B3, L3, H3), dtype=jnp.float32)
    w1c, b1c, w2c, b2c = _make_params(kp3, H3)
    out3 = pointwise_feedforward(x3, w1c, b1c, w2c, b2c)
    out3 = jax.block_until_ready(out3)
    ref3 = reference(x3, w1c, b1c, w2c, b2c)
    assert jnp.allclose(out3, ref3, atol=1e-4, rtol=1e-4), "padded-shape mismatch"

    print("KERNEL_OK")
</pallas_src>

<mosaic_0001>
module attributes {stable_mosaic.version = 11 : i64} {
  func.func @_ffn_kernel_resident(%arg0: i32, %arg1: memref<16x128xf32, #tpu.memory_space<vmem>>, %arg2: memref<128x128xf32, #tpu.memory_space<vmem>>, %arg3: memref<1x128xf32, #tpu.memory_space<vmem>>, %arg4: memref<128x128xf32, #tpu.memory_space<vmem>>, %arg5: memref<1x128xf32, #tpu.memory_space<vmem>>, %arg6: memref<16x128xf32, #tpu.memory_space<vmem>>) attributes {dimension_semantics = [#tpu.dimension_semantics<parallel>], iteration_bounds = array<i64: 1>, scalar_prefetch = 0 : i64, scratch_operands = 0 : i64, tpu.core_type = #tpu.core_type<tc>, window_params = [{transform_indices = @transform_0, window_bounds = array<i64: 16, 128>}, {pipeline_mode = #tpu.pipeline_mode<synchronous>, transform_indices = @transform_1, window_bounds = array<i64: 128, 128>}, {pipeline_mode = #tpu.pipeline_mode<synchronous>, transform_indices = @transform_2, window_bounds = array<i64: 1, 128>}, {pipeline_mode = #tpu.pipeline_mode<synchronous>, transform_indices = @transform_3, window_bounds = array<i64: 128, 128>}, {pipeline_mode = #tpu.pipeline_mode<synchronous>, transform_indices = @transform_4, window_bounds = array<i64: 1, 128>}, {transform_indices = @transform_5, window_bounds = array<i64: 16, 128>}]} {
    %c0 = arith.constant 0 : index
    %c0_0 = arith.constant 0 : index
    %0 = vector.load %arg1[%c0, %c0_0] : memref<16x128xf32, #tpu.memory_space<vmem>>, vector<16x128xf32>
    %c0_1 = arith.constant 0 : index
    %c0_2 = arith.constant 0 : index
    %1 = vector.load %arg2[%c0_1, %c0_2] : memref<128x128xf32, #tpu.memory_space<vmem>>, vector<128x128xf32>
    %cst = arith.constant dense<0.000000e+00> : vector<16x128xf32>
    %2 = tpu.matmul %0, %1, %cst {dimension_numbers = #tpu.dot_dimension_numbers<[1], [0], [0], [1], [0, 0, 1, 1], [], []>} : vector<16x128xf32>, vector<128x128xf32>, vector<16x128xf32> -> vector<16x128xf32>
    %c0_3 = arith.constant 0 : index
    %c0_4 = arith.constant 0 : index
    %3 = vector.load %arg3[%c0_3, %c0_4] : memref<1x128xf32, #tpu.memory_space<vmem>>, vector<1x128xf32>
    %4 = vector.broadcast %3 : vector<1x128xf32> to vector<16x128xf32>
    %5 = arith.addf %2, %4 : vector<16x128xf32>
    %cst_5 = arith.constant 0.000000e+00 : f32
    %6 = vector.broadcast %cst_5 : f32 to vector<16x128xf32>
    %7 = arith.maximumf %5, %6 : vector<16x128xf32>
    %c0_6 = arith.constant 0 : index
    %c0_7 = arith.constant 0 : index
    %8 = vector.load %arg4[%c0_6, %c0_7] : memref<128x128xf32, #tpu.memory_space<vmem>>, vector<128x128xf32>
    %cst_8 = arith.constant dense<0.000000e+00> : vector<16x128xf32>
    %9 = tpu.matmul %7, %8, %cst_8 {dimension_numbers = #tpu.dot_dimension_numbers<[1], [0], [0], [1], [0, 0, 1, 1], [], []>} : vector<16x128xf32>, vector<128x128xf32>, vector<16x128xf32> -> vector<16x128xf32>
    %c0_9 = arith.constant 0 : index
    %c0_10 = arith.constant 0 : index
    %10 = vector.load %arg5[%c0_9, %c0_10] : memref<1x128xf32, #tpu.memory_space<vmem>>, vector<1x128xf32>
    %11 = vector.broadcast %10 : vector<1x128xf32> to vector<16x128xf32>
    %12 = arith.addf %9, %11 : vector<16x128xf32>
    %13 = arith.addf %12, %0 : vector<16x128xf32>
    %c0_11 = arith.constant 0 : index
    %c0_12 = arith.constant 0 : index
    %14 = vector.load %arg6[%c0_11, %c0_12] : memref<16x128xf32, #tpu.memory_space<vmem>>, vector<16x128xf32>
    tpu.vector_store %arg6[%c0_11, %c0_12], %13 {strides = array<i32>} : memref<16x128xf32, #tpu.memory_space<vmem>>, vector<16x128xf32>,
    return
  }
  func.func @transform_0(%arg0: i32) -> (i32, i32) {
    %c0_i32 = arith.constant 0 : i32
    %c0_i32_0 = arith.constant 0 : i32
    return %arg0, %c0_i32 : i32, i32
  }
  func.func @transform_1(%arg0: i32) -> (i32, i32) {
    %c0_i32 = arith.constant 0 : i32
    %c0_i32_0 = arith.constant 0 : i32
    %c0_i32_1 = arith.constant 0 : i32
    return %c0_i32, %c0_i32_0 : i32, i32
  }
  func.func @transform_2(%arg0: i32) -> (i32, i32) {
    %c0_i32 = arith.constant 0 : i32
    %c0_i32_0 = arith.constant 0 : i32
    %c0_i32_1 = arith.constant 0 : i32
    return %c0_i32, %c0_i32_0 : i32, i32
  }
  func.func @transform_3(%arg0: i32) -> (i32, i32) {
    %c0_i32 = arith.constant 0 : i32
    %c0_i32_0 = arith.constant 0 : i32
    %c0_i32_1 = arith.constant 0 : i32
    return %c0_i32, %c0_i32_0 : i32, i32
  }
  func.func @transform_4(%arg0: i32) -> (i32, i32) {
    %c0_i32 = arith.constant 0 : i32
    %c0_i32_0 = arith.constant 0 : i32
    %c0_i32_1 = arith.constant 0 : i32
    return %c0_i32, %c0_i32_0 : i32, i32
  }
  func.func @transform_5(%arg0: i32) -> (i32, i32) {
    %c0_i32 = arith.constant 0 : i32
    %c0_i32_0 = arith.constant 0 : i32
    return %arg0, %c0_i32 : i32, i32
  }
}

</mosaic_0001>

<bundles_post_ra>
// kernel: pointwise_feedforward_prepared.1
= control target key start
LH: loop header
LB: loop body
LE: loop exit
PB: predicated region body
PF: predicated region fallthrough
CT: control target
= control target key end

     0   :  { %10 = vsyncpa [#allocation3], 0  ;;  %s476_s0 = inlined_call_operand.vmem [shape: f32[16,128], index: 0, kind: input, shape index: {}]   ;;  %s477_s1 = inlined_call_operand.hbm [shape: f32[128,128], index: 1, kind: input, shape index: {}]   ;;  %s478_s2 = inlined_call_operand.vmem [shape: f32[1,128], index: 2, kind: input, shape index: {}]   ;;  %s479_s3 = inlined_call_operand.hbm [shape: f32[128,128], index: 3, kind: input, shape index: {}]   ;;  %s480_s4 = inlined_call_operand.vmem [shape: f32[1,128], index: 4, kind: input, shape index: {}]   ;;  %s481_s5 = inlined_call_operand.vmem [shape: f32[16,128], index: 5, kind: output, shape index: {}]  }
   0x1   :  { %11 = vsyncpa [#allocation5], 0  ;;  %s414_s18 = smov [#allocation2]  }
   0x2   :  { %s19_s19 = sshll.u32 %s414_s18, 4  ;;  %s20_s19 = int_to_ptr.vmem [resolvable:$true] %s19_s19 }
   0x3   :  { %s378_s20 = scalar_lea.vmem %s20_s19, 2048  ;;  %p383_p1 = scmp.lt.s32.totalorder %s20_s19, %s20_s19 }
   0x4   :  { %p379_p0 = scmp.ne.s32.totalorder %s20_s19, %s378_s20  ;;  %p384_p2 = scmp.lt.s32.totalorder %s378_s20, %s378_s20 }
   0x6   :  { %p385_p3 = por %p384_p2, %p383_p1 }
   0x8   :  { %p386_p4 = pnand %p385_p3, %p379_p0 }
   0xa   :  { %389 = shalt.err (!%p386_p4)
}
   0xb   :  { %s415_s21 = smov 128   ;;  %s416_s22 = smov 8  }
   0xc   :  { %25 = dma.hbm_to_vmem [thread:$0]  %s477_s1, 2048, %s20_s19, [#allocation3], %s415_s21, %s415_s21, %s416_s22  }
   0xd   :  { %s417_s25 = smov [#allocation4]  }
   0xe   :  { %s33_s26 = sshll.u32 %s417_s25, 4  ;;  %s34_s26 = int_to_ptr.vmem [resolvable:$true] %s33_s26 }
   0xf   :  { %s398_s27 = scalar_lea.vmem %s34_s26, 2048  ;;  %p403_p6 = scmp.lt.s32.totalorder %s34_s26, %s34_s26 }
  0x10   :  { %p399_p5 = scmp.ne.s32.totalorder %s34_s26, %s398_s27  ;;  %p404_p7 = scmp.lt.s32.totalorder %s398_s27, %s398_s27 }
  0x12   :  { %p405_p8 = por %p404_p7, %p403_p6 }
  0x14   :  { %p406_p9 = pnand %p405_p8, %p399_p5 }
  0x16   :  { %409 = shalt.err (!%p406_p9)
}
  0x17   :  { %39 = dma.hbm_to_vmem [thread:$0]  %s479_s3, 2048, %s34_s26, [#allocation5], %s415_s21, %s415_s21, %s416_s22  }
  0x18   :  { %410 = dma.done.wait [#allocation3], 2048  }
  0x19   :  { %411 = vsyncadd [#allocation3], 4294965248 }
  0x1a   :  { %412 = dma.done.wait [#allocation5], 2048  }
  0x1b   :  { %413 = vsyncadd [#allocation5], 4294965248  ;;  %v65_v0 = vld [vmem:[#allocation2 + $0x78] sm:$0xff]  ;;  %v64_v1 = vld [vmem:[#allocation2 + $0x70] sm:$0xff] }
  0x1c   :  { %296 = vmatprep.subr.mxu0 %v65_v0  ;;  %v63_v2 = vld [vmem:[#allocation2 + $0x68] sm:$0xff]  ;;  %v62_v3 = vld [vmem:[#allocation2 + $0x60] sm:$0xff]  ;;  %v61_v5 = vld [vmem:[#allocation2 + $0x58] sm:$0xff] }
  0x1d   :  { %297 = vmatpush3.msra.mxu0 %v65_v0  ;;  %v457_v4 = vld [vmem:[%s476_s0] sm:$0xff]  ;;  %v165_v6 = vld [vmem:[#allocation4 + $0x78] sm:$0xff]  ;;  %v164_v7 = vld [vmem:[#allocation4 + $0x70] sm:$0xff] }
  0x1e   :  { %298 = vmatprep.subr.mxu0 %v64_v1  ;;  %328 = vmatprep.mubr.f32.mxu0 %v457_v4  ;;  %v60_v8 = vld [vmem:[#allocation2 + $0x50] sm:$0xff]  ;;  %v163_v9 = vld [vmem:[#allocation4 + $0x68] sm:$0xff]  ;;  %v162_v11 = vld [vmem:[#allocation4 + $0x60] sm:$0xff] }
  0x1f   :  { %299 = vmatpush3.msra.mxu0 %v64_v1  ;;  %331 = vmatprep.subr.mxu1 %v165_v6  ;;  %v59_v10 = vld [vmem:[#allocation2 + $0x48] sm:$0xff]  ;;  %v58_v12 = vld [vmem:[#allocation2 + $0x40] sm:$0xff]  ;;  %v161_v13 = vld [vmem:[#allocation4 + $0x58] sm:$0xff] }
  0x20   :  { %300 = vmatprep.subr.mxu0 %v63_v2  ;;  %332 = vmatpush3.msra.mxu1 %v165_v6  ;;  %v57_v14 = vld [vmem:[#allocation2 + $0x38] sm:$0xff]  ;;  %v160_v15 = vld [vmem:[#allocation4 + $0x50] sm:$0xff]  ;;  %v159_v17 = vld [vmem:[#allocation4 + $0x48] sm:$0xff] }
  0x21   :  { %301 = vmatpush3.msra.mxu0 %v63_v2  ;;  %333 = vmatprep.subr.mxu1 %v164_v7  ;;  %v56_v16 = vld [vmem:[#allocation2 + $0x30] sm:$0xff]  ;;  %v55_v18 = vld [vmem:[#allocation2 + $0x28] sm:$0xff]  ;;  %v158_v19 = vld [vmem:[#allocation4 + $0x40] sm:$0xff] }
  0x22   :  { %302 = vmatprep.subr.mxu0 %v62_v3  ;;  %334 = vmatpush3.msra.mxu1 %v164_v7  ;;  %v54_v20 = vld [vmem:[#allocation2 + $0x20] sm:$0xff]  ;;  %v157_v21 = vld [vmem:[#allocation4 + $0x38] sm:$0xff]  ;;  %v156_v23 = vld [vmem:[#allocation4 + $0x30] sm:$0xff] }
  0x23   :  { %303 = vmatpush3.msra.mxu0 %v62_v3  ;;  %335 = vmatprep.subr.mxu1 %v163_v9  ;;  %v53_v22 = vld [vmem:[#allocation2 + $0x18] sm:$0xff]  ;;  %v52_v24 = vld [vmem:[#allocation2 + $0x10] sm:$0xff]  ;;  %v155_v25 = vld [vmem:[#allocation4 + $0x28] sm:$0xff] }
  0x24   :  { %304 = vmatprep.subr.mxu0 %v61_v5  ;;  %336 = vmatpush3.msra.mxu1 %v163_v9  ;;  %v51_v26 = vld [vmem:[#allocation2 + $0x8] sm:$0xff]  ;;  %v154_v27 = vld [vmem:[#allocation4 + $0x20] sm:$0xff]  ;;  %v153_v30 = vld [vmem:[#allocation4 + $0x18] sm:$0xff] }
  0x25   :  { %305 = vmatpush3.msra.mxu0 %v61_v5  ;;  %337 = vmatprep.subr.mxu1 %v162_v11  ;;  %v50_v28 = vld [vmem:[#allocation2] sm:$0xff]  ;;  %v49_v29 = vld [vmem:[%s476_s0 + $0x8] sm:$0xff]  ;;  %v152_v31 = vld [vmem:[#allocation4 + $0x10] sm:$0xff] }
  0x26   :  { %306 = vmatprep.subr.mxu0 %v60_v8  ;;  %338 = vmatpush3.msra.mxu1 %v162_v11  ;;  %v151_v32 = vld [vmem:[#allocation4 + $0x8] sm:$0xff]  ;;  %v150_v33 = vld [vmem:[#allocation4] sm:$0xff] }
  0x27   :  { %307 = vmatpush3.msra.mxu0 %v60_v8  ;;  %339 = vmatprep.subr.mxu1 %v161_v13  ;;  %v258_v34 = vld [vmem:[%s478_s2] ss:$0 sm:$0xff] }
  0x28   :  { %308 = vmatprep.subr.mxu0 %v59_v10  ;;  %340 = vmatpush3.msra.mxu1 %v161_v13  ;;  %v259_v41 = vld [vmem:[%s480_s4] ss:$0 sm:$0xff] }
  0x29   :  { %309 = vmatpush3.msra.mxu0 %v59_v10  ;;  %341 = vmatprep.subr.mxu1 %v160_v15 }
  0x2a   :  { %310 = vmatprep.subr.mxu0 %v58_v12  ;;  %342 = vmatpush3.msra.mxu1 %v160_v15 }
  0x2b   :  { %311 = vmatpush3.msra.mxu0 %v58_v12  ;;  %343 = vmatprep.subr.mxu1 %v159_v17 }
  0x2c   :  { %312 = vmatprep.subr.mxu0 %v57_v14  ;;  %344 = vmatpush3.msra.mxu1 %v159_v17 }
  0x2d   :  { %313 = vmatpush3.msra.mxu0 %v57_v14  ;;  %345 = vmatprep.subr.mxu1 %v158_v19 }
  0x2e   :  { %314 = vmatprep.subr.mxu0 %v56_v16  ;;  %346 = vmatpush3.msra.mxu1 %v158_v19 }
  0x2f   :  { %315 = vmatpush3.msra.mxu0 %v56_v16  ;;  %347 = vmatprep.subr.mxu1 %v157_v21 }
  0x30   :  { %316 = vmatprep.subr.mxu0 %v55_v18  ;;  %348 = vmatpush3.msra.mxu1 %v157_v21 }
  0x31   :  { %317 = vmatpush3.msra.mxu0 %v55_v18  ;;  %349 = vmatprep.subr.mxu1 %v156_v23 }
  0x32   :  { %318 = vmatprep.subr.mxu0 %v54_v20  ;;  %350 = vmatpush3.msra.mxu1 %v156_v23 }
  0x33   :  { %319 = vmatpush3.msra.mxu0 %v54_v20  ;;  %351 = vmatprep.subr.mxu1 %v155_v25 }
  0x34   :  { %320 = vmatprep.subr.mxu0 %v53_v22  ;;  %352 = vmatpush3.msra.mxu1 %v155_v25 }
  0x35   :  { %321 = vmatpush3.msra.mxu0 %v53_v22  ;;  %353 = vmatprep.subr.mxu1 %v154_v27 }
  0x36   :  { %322 = vmatprep.subr.mxu0 %v52_v24  ;;  %354 = vmatpush3.msra.mxu1 %v154_v27 }
  0x37   :  { %323 = vmatpush3.msra.mxu0 %v52_v24  ;;  %355 = vmatprep.subr.mxu1 %v153_v30 }
  0x38   :  { %324 = vmatprep.subr.mxu0 %v51_v26  ;;  %356 = vmatpush3.msra.mxu1 %v153_v30 }
  0x39   :  { %325 = vmatpush3.msra.mxu0 %v51_v26  ;;  %357 = vmatprep.subr.mxu1 %v152_v31 }
  0x3a   :  { %326 = vmatprep.subr.mxu0 %v50_v28  ;;  %358 = vmatpush3.msra.mxu1 %v152_v31 }
  0x3b   :  { %327 = vmatpush3.msra.mxu0 %v50_v28  ;;  %359 = vmatprep.subr.mxu1 %v151_v32 }
  0x3c   :  { %329 = vmatmul.mubr.f32.vlgmr.msra.gmra.mxu0 %v49_v29  ;;  %360 = vmatpush3.msra.mxu1 %v151_v32 }
  0x3d   :  { %361 = vmatprep.subr.mxu1 %v150_v33 }
  0x3e   :  { %362 = vmatpush3.msra.mxu1 %v150_v33 }
  0xfc   :  { %v330_v35 = vpop.f32.mrf.mxu0 }
  0xfd   :  { %v145_v36 = vadd.f32 %v330_v35, %v258_v34 }
  0xfe   :  { %v139_v37 = vpop.f32.mrf.mxu0 }
  0xff   :  { %v140_v38 = vadd.f32 %v258_v34, %v139_v37  ;;  %v149_v40 = vmax.f32 %v145_v36, 0.0 }
 0x101   :  { %v148_v39 = vmax.f32 %v140_v38, 0.0 }
 0x103   :  { %363 = vmatprep.mubr.f32.mxu1 %v148_v39 }
 0x104   :  { %364 = vmatmul.mubr.f32.vlgmr.msra.gmra.mxu1 %v149_v40 }
 0x1c4   :  { %v365_v42 = vpop.f32.mrf.mxu1 }
 0x1c5   :  { %v245_v43 = vadd.f32 %v365_v42, %v259_v41 }
 0x1c6   :  { %v239_v44 = vpop.f32.mrf.mxu1 }
 0x1c7   :  { %v249_v45 = vadd.f32 %v245_v43, %v49_v29  ;;  %v240_v46 = vadd.f32 %v259_v41, %v239_v44 }
 0x1c9   :  { %251 = vst [vmem:[%s481_s5 + $0x8] sm:$0xff] %v249_v45  ;;  %v248_v47 = vadd.f32 %v240_v46, %v457_v4 }
 0x1cb   :  { %250 = vst [vmem:[%s481_s5] sm:$0xff] %v248_v47 }
 0x1cc   :  { %256 = vsyncpa [#allocation3], 1 }
 0x1cd   :  { %257 = vsyncpa [#allocation5], 1 }

</bundles_post_ra>
